<compile_context>
chip_gen: v5e
topology: v5e:2x2
jax: 0.10.0
libtpu: 0.0.40
codegen_flags: <defaults>
</compile_context>

<pallas_src>
import functools

import jax
import jax.numpy as jnp
from jax.experimental import pallas as pl
from jax.experimental.pallas import tpu as pltpu

LANE = 128        # f32 vreg lane width (class dim padded to this)
NEG_BIAS = -1e30  # pad-bias so padded classes vanish from the softmax


def classifier_kernel(x_ref, w_ref, b_ref, o_ref, *, scale):
    """Fused Linear(1024 -> Cpad) + Softmax(dim=1) on a lane-dense tile.

    x_ref: (B,    1024)  f32  in VMEM (cast to bf16 here, not in XLA)
    w_ref: (1024, Cpad)  int8 in VMEM (transposed + padded + quantized weight)
    b_ref: (1,    Cpad)  f32  in VMEM (padded columns = -1e30)
    o_ref: (B,    Cpad)  f32  in VMEM
    scale: python float, per-tensor weight dequant scale (compile-time const)
    """
    x = x_ref[...].astype(jnp.bfloat16)          # VPU cast, tiny
    w = w_ref[...].astype(jnp.bfloat16)          # int8 values are exact in bf16
    # bf16 operands, f32 accumulation on the MXU; dequant folded into a
    # cheap post-scale on the (B, Cpad) output instead of the weight tile.
    logits = jnp.dot(x, w, preferred_element_type=jnp.float32) * scale
    logits = logits + b_ref[...]                 # broadcast bias over batch
    # Numerically-stable softmax over the class axis (dim=1), all f32.
    m = jnp.max(logits, axis=-1, keepdims=True)
    e = jnp.exp(logits - m)                      # padded cols -> exp(-huge) = 0
    denom = jnp.sum(e, axis=-1, keepdims=True)
    o_ref[...] = e / denom                       # exact divide: rows sum to 1


def prepare_classifier_params(weight, bias):
    """One-time (model-load) prep: transpose, pad to lane width, int8-quantize.

    weight: (num_classes, in_features) PyTorch nn.Linear layout
    bias:   (num_classes,)
    Returns (w_q int8 (in_features, Cpad), bias f32 (1, Cpad), scale float).
    """
    num_classes, in_features = weight.shape
    c_pad = max(LANE, ((num_classes + LANE - 1) // LANE) * LANE)

    max_abs = float(jnp.max(jnp.abs(weight)))
    scale = max(max_abs / 127.0, 1e-12)
    w_q_core = jnp.clip(jnp.round(weight.T.astype(jnp.float32) / scale),
                        -127, 127).astype(jnp.int8)
    w_q = jnp.zeros((in_features, c_pad), dtype=jnp.int8)
    w_q = w_q.at[:, :num_classes].set(w_q_core)

    b2 = jnp.full((1, c_pad), NEG_BIAS, dtype=jnp.float32)
    b2 = b2.at[0, :num_classes].set(bias.astype(jnp.float32))
    return w_q, b2, scale


@functools.partial(jax.jit, static_argnames=("num_classes", "scale"))
def classifier_forward(x_nchw, w_q, b2, *, num_classes, scale):
    """x_nchw: (B, C, H, W); w_q/b2/scale from prepare_classifier_params."""
    batch_size = x_nchw.shape[0]
    in_features = w_q.shape[0]
    c_pad = w_q.shape[1]

    # TODO(synk): feature_extractor (`model`) treated as identity.
    feats = x_nchw.reshape(batch_size, -1)       # free row-major reshape, f32

    cost = pl.CostEstimate(
        flops=2 * batch_size * in_features * c_pad,
        transcendentals=batch_size * c_pad,
        bytes_accessed=(feats.size * 4           # f32 activations
                        + w_q.size * 1           # int8 weight
                        + b2.size * 4            # f32 bias
                        + batch_size * c_pad * 4),  # f32 output
    )

    out = pl.pallas_call(
        functools.partial(classifier_kernel, scale=scale),
        out_shape=jax.ShapeDtypeStruct((batch_size, c_pad), jnp.float32),
        in_specs=[
            pl.BlockSpec(memory_space=pltpu.MemorySpace.VMEM),
            pl.BlockSpec(memory_space=pltpu.MemorySpace.VMEM),
            pl.BlockSpec(memory_space=pltpu.MemorySpace.VMEM),
        ],
        out_specs=pl.BlockSpec(memory_space=pltpu.MemorySpace.VMEM),
        cost_estimate=cost,
    )(feats, w_q, b2)

    # Padded classes are exactly 0; slice back to the module's output shape.
    # (A fused consumer could keep the lane-dense (B, 128) block instead.)
    return out[:, :num_classes]


if __name__ == "__main__":
    key = jax.random.PRNGKey(0)
    k_x, k_w, k_b = jax.random.split(key, 3)

    B, C, H, W = 2, 4, 16, 16          # 4*16*16 = 1024 features after flatten
    num_classes = 10
    in_features = C * H * W            # 1024

    x = jax.random.normal(k_x, (B, C, H, W), dtype=jnp.float32)

    # Deterministic nn.Linear-style init: U(-1/sqrt(fan_in), 1/sqrt(fan_in))
    bound = 1.0 / (in_features ** 0.5)
    weight = jax.random.uniform(k_w, (num_classes, in_features),
                                minval=-bound, maxval=bound, dtype=jnp.float32)
    bias = jax.random.uniform(k_b, (num_classes,),
                              minval=-bound, maxval=bound, dtype=jnp.float32)

    # One-time parameter prep (hoisted out of the per-call forward path).
    w_q, b2, scale = prepare_classifier_params(weight, bias)

    probs = classifier_forward(x, w_q, b2, num_classes=num_classes, scale=scale)
    probs = jax.block_until_ready(probs)

    # Sanity: shape, rows sum to 1 (exact divide), matches f32 reference
    # (bf16 matmul + int8 weight quantization => relaxed tolerance).
    ref = jax.nn.softmax(x.reshape(B, -1) @ weight.T + bias, axis=1)
    assert probs.shape == (B, num_classes)
    assert jnp.allclose(jnp.sum(probs, axis=1), 1.0, atol=1e-4)
    assert jnp.allclose(probs, ref, atol=1e-2)

    print("KERNEL_OK")
</pallas_src>

<mosaic_0001>
module attributes {stable_mosaic.version = 11 : i64} {
  func.func @classifier_kernel(%arg0: memref<2x1024xf32, #tpu.memory_space<vmem>>, %arg1: memref<1024x128xi8, #tpu.memory_space<vmem>>, %arg2: memref<1x128xf32, #tpu.memory_space<vmem>>, %arg3: memref<2x128xf32, #tpu.memory_space<vmem>>) attributes {dimension_semantics = [], scalar_prefetch = 0 : i64, scratch_operands = 0 : i64, tpu.core_type = #tpu.core_type<tc>} {
    %c0 = arith.constant 0 : index
    %c0_0 = arith.constant 0 : index
    %0 = vector.load %arg0[%c0, %c0_0] : memref<2x1024xf32, #tpu.memory_space<vmem>>, vector<2x1024xf32>
    %1 = arith.truncf %0 : vector<2x1024xf32> to vector<2x1024xbf16>
    %c0_1 = arith.constant 0 : index
    %c0_2 = arith.constant 0 : index
    %2 = vector.load %arg1[%c0_1, %c0_2] : memref<1024x128xi8, #tpu.memory_space<vmem>>, vector<1024x128xi8>
    %3 = arith.sitofp %2 : vector<1024x128xi8> to vector<1024x128xbf16>
    %cst = arith.constant dense<0.000000e+00> : vector<2x128xf32>
    %4 = tpu.matmul %1, %3, %cst {dimension_numbers = #tpu.dot_dimension_numbers<[1], [0], [0], [1], [0, 0, 1, 1], [], []>} : vector<2x1024xbf16>, vector<1024x128xbf16>, vector<2x128xf32> -> vector<2x128xf32>
    %cst_3 = arith.constant 2.46027135E-4 : f32
    %5 = vector.broadcast %cst_3 : f32 to vector<2x128xf32>
    %6 = arith.mulf %4, %5 : vector<2x128xf32>
    %c0_4 = arith.constant 0 : index
    %c0_5 = arith.constant 0 : index
    %7 = vector.load %arg2[%c0_4, %c0_5] : memref<1x128xf32, #tpu.memory_space<vmem>>, vector<1x128xf32>
    %8 = vector.broadcast %7 : vector<1x128xf32> to vector<2x128xf32>
    %9 = arith.addf %6, %8 : vector<2x128xf32>
    %cst_6 = arith.constant dense<0xFF800000> : vector<2xf32>
    %10 = vector.multi_reduction <maximumf>, %9, %cst_6 [1] : vector<2x128xf32> to vector<2xf32>
    %11 = vector.shape_cast %10 : vector<2xf32> to vector<2x1xf32>
    %12 = vector.broadcast %11 : vector<2x1xf32> to vector<2x128xf32>
    %13 = arith.subf %9, %12 : vector<2x128xf32>
    %14 = math.exp %13 : vector<2x128xf32>
    %cst_7 = arith.constant dense<0.000000e+00> : vector<2xf32>
    %15 = vector.multi_reduction <add>, %14, %cst_7 [1] : vector<2x128xf32> to vector<2xf32>
    %16 = vector.shape_cast %15 : vector<2xf32> to vector<2x1xf32>
    %17 = vector.broadcast %16 : vector<2x1xf32> to vector<2x128xf32>
    %18 = arith.divf %14, %17 : vector<2x128xf32>
    %c0_8 = arith.constant 0 : index
    %c0_9 = arith.constant 0 : index
    %19 = vector.load %arg3[%c0_8, %c0_9] : memref<2x128xf32, #tpu.memory_space<vmem>>, vector<2x128xf32>
    tpu.vector_store %arg3[%c0_8, %c0_9], %18 {strides = array<i32>} : memref<2x128xf32, #tpu.memory_space<vmem>>, vector<2x128xf32>,
    return
  }
}

</mosaic_0001>

<bundles_post_ra>
// kernel: classifier_forward.1
= control target key start
LH: loop header
LB: loop body
LE: loop exit
PB: predicated region body
PF: predicated region fallthrough
CT: control target
= control target key end

     0   :  { %8 = vsyncpa [#allocation3], 0  ;;  %s679_s0 = inlined_call_operand.vmem [shape: f32[2,1024], index: 0, kind: input, shape index: {}]   ;;  %s680_s1 = inlined_call_operand.hbm [shape: s8[1024,128], index: 1, kind: input, shape index: {}]   ;;  %s681_s2 = inlined_call_operand.vmem [shape: f32[1,128], index: 2, kind: input, shape index: {}]   ;;  %s682_s3 = inlined_call_operand.hbm [shape: f32[2,128], index: 3, kind: output, shape index: {}]  }
   0x1   :  { %9 = vsyncpa [#allocation4], 0  ;;  %s16_s14 = sshll.u32 %s680_s1, 4  ;;  %s628_s15 = smov [#allocation2]   ;;  %s17_s14 = int_to_ptr.hbm [resolvable:$true] %s16_s14 }
   0x2   :  { %s18_s16 = sshll.u32 %s628_s15, 4  ;;  %s629_s17 = smov 128   ;;  %s19_s16 = int_to_ptr.vmem [resolvable:$true] %s18_s16 }
   0x3   :  { %s630_s18 = smov 8  }
   0x4   :  { %24 = dma.hbm_to_vmem [thread:$0]  %s17_s14, 4096, %s19_s16, [#allocation3], %s629_s17, %s629_s17, %s630_s18  }
   0x5   :  { %624 = dma.done.wait [#allocation3], 4096  }
   0x6   :  { %625 = vsyncadd [#allocation3], 4294963200  ;;  %v65_v0 = vld [vmem:[#allocation2 + $0x18] sm:$0xff]  ;;  %v64_v28 = vld [vmem:[#allocation2 + $0x10] sm:$0xff]  ;;  %vm524_vm0 = vcmask 1041408   ;;  %s557_s26 = sshll.u32 %s682_s3, 4  ;;  %s558_s26 = int_to_ptr.hbm [resolvable:$true] %s557_s26 }
   0x7   :  { %v69_v1 = vld [vmem:[#allocation2 + $0x38] sm:$0xff]  ;;  %v108_v3 = vunpack.c.2.s8 %v65_v0  ;;  %v109_v4 = vunpack.c.3.s8 %v65_v0  ;;  %v106_v22 = vunpack.c.0.s8 %v65_v0  ;;  %v107_v23 = vunpack.c.1.s8 %v65_v0  ;;  %v68_v37 = vld [vmem:[#allocation2 + $0x30] sm:$0xff] }
   0x8   :  { %v73_v2 = vld [vmem:[#allocation2 + $0x58] sm:$0xff]  ;;  %v124_v5 = vunpack.c.2.s8 %v69_v1  ;;  %v125_v6 = vunpack.c.3.s8 %v69_v1  ;;  %v122_v26 = vunpack.c.0.s8 %v69_v1  ;;  %v123_v27 = vunpack.c.1.s8 %v69_v1  ;;  %v72_v42 = vld [vmem:[#allocation2 + $0x50] sm:$0xff] }
   0x9   :  { %v77_v7 = vld [vmem:[#allocation2 + $0x78] sm:$0xff]  ;;  %v140_v8 = vunpack.c.2.s8 %v73_v2  ;;  %v141_v9 = vunpack.c.3.s8 %v73_v2  ;;  %v236_v12 = vcvt.s32.f32 %v108_v3  ;;  %v237_v13 = vcvt.s32.f32 %v109_v4  ;;  %v76_v47 = vld [vmem:[#allocation2 + $0x70] sm:$0xff] }
   0xa   :  { %v156_v10 = vunpack.c.2.s8 %v77_v7  ;;  %v157_v11 = vunpack.c.3.s8 %v77_v7  ;;  %v252_v14 = vcvt.s32.f32 %v124_v5  ;;  %v253_v15 = vcvt.s32.f32 %v125_v6  ;;  %v31_v0 = vld [vmem:[%s679_s0] sm:$0xff] }
   0xb   :  { %v268_v16 = vcvt.s32.f32 %v140_v8  ;;  %v269_v17 = vcvt.s32.f32 %v141_v9  ;;  %v357_v20 = vpack.c.bf16 %v237_v13, %v236_v12  ;;  %v234_v29 = vcvt.s32.f32 %v106_v22  ;;  %35 = vst [vmem:[#allocation1] ss:$4 sm:$0xff] %v31_v0  ;;  %v63_v9 = vld [vmem:[#allocation2 + $0x8] sm:$0xff] }
   0xc   :  { %v284_v18 = vcvt.s32.f32 %v156_v10  ;;  %v285_v19 = vcvt.s32.f32 %v157_v11  ;;  %v365_v21 = vpack.c.bf16 %v253_v15, %v252_v14  ;;  %v235_v30 = vcvt.s32.f32 %v107_v23  ;;  %v71_v23 = vld [vmem:[#allocation2 + $0x48] sm:$0xff] }
   0xd   :  { %v373_v24 = vpack.c.bf16 %v269_v17, %v268_v16  ;;  %414 = vmatpush.bf16.msra.mxu0 %v357_v20  ;;  %v138_v31 = vunpack.c.0.s8 %v73_v2  ;;  %v139_v32 = vunpack.c.1.s8 %v73_v2  ;;  %v250_v33 = vcvt.s32.f32 %v122_v26 }
   0xe   :  { %v381_v25 = vpack.c.bf16 %v285_v19, %v284_v18  ;;  %427 = vmatpush.bf16.msra.mxu1 %v365_v21  ;;  %v251_v34 = vcvt.s32.f32 %v123_v27  ;;  %v154_v35 = vunpack.c.0.s8 %v77_v7  ;;  %v155_v36 = vunpack.c.1.s8 %v77_v7  ;;  %v67_v18 = vld [vmem:[#allocation2 + $0x28] sm:$0xff] }
   0xf   :  { %440 = vmatpush.bf16.msra.mxu2 %v373_v24  ;;  %v356_v38 = vpack.c.bf16 %v235_v30, %v234_v29  ;;  %v266_v39 = vcvt.s32.f32 %v138_v31  ;;  %v267_v40 = vcvt.s32.f32 %v139_v32  ;;  %v104_v41 = vunpack.c.2.s8 %v64_v28 }
  0x10   :  { %453 = vmatpush.bf16.msra.mxu3 %v381_v25  ;;  %v364_v43 = vpack.c.bf16 %v251_v34, %v250_v33  ;;  %v282_v44 = vcvt.s32.f32 %v154_v35  ;;  %v283_v45 = vcvt.s32.f32 %v155_v36  ;;  %v105_v46 = vunpack.c.3.s8 %v64_v28 }
  0x11   :  { %415 = vmatpush.bf16.msra.mxu0 %v356_v38  ;;  %v372_v48 = vpack.c.bf16 %v267_v40, %v266_v39  ;;  %v232_v49 = vcvt.s32.f32 %v104_v41  ;;  %v120_v50 = vunpack.c.2.s8 %v68_v37  ;;  %v121_v51 = vunpack.c.3.s8 %v68_v37 }
  0x12   :  { %428 = vmatpush.bf16.msra.mxu1 %v364_v43  ;;  %v380_v52 = vpack.c.bf16 %v283_v45, %v282_v44  ;;  %v233_v53 = vcvt.s32.f32 %v105_v46  ;;  %v136_v54 = vunpack.c.2.s8 %v72_v42  ;;  %v137_v55 = vunpack.c.3.s8 %v72_v42 }
  0x13   :  { %441 = vmatpush.bf16.msra.mxu2 %v372_v48  ;;  %v248_v56 = vcvt.s32.f32 %v120_v50  ;;  %v249_v57 = vcvt.s32.f32 %v121_v51  ;;  %v152_v58 = vunpack.c.2.s8 %v76_v47  ;;  %v153_v59 = vunpack.c.3.s8 %v76_v47 }
  0x14   :  { %454 = vmatpush.bf16.msra.mxu3 %v380_v52  ;;  %v355_v60 = vpack.c.bf16 %v233_v53, %v232_v49  ;;  %v264_v61 = vcvt.s32.f32 %v136_v54  ;;  %v265_v62 = vcvt.s32.f32 %v137_v55  ;;  %v102_v63 = vunpack.c.0.s8 %v64_v28  ;;  %v62_v53 = vld [vmem:[#allocation2] sm:$0xff] }
  0x15   :  { %v363_v1 = vpack.c.bf16 %v249_v57, %v248_v56  ;;  %v280_v2 = vcvt.s32.f32 %v152_v58  ;;  %v281_v3 = vcvt.s32.f32 %v153_v59  ;;  %v103_v4 = vunpack.c.1.s8 %v64_v28  ;;  %v75_v28 = vld [vmem:[#allocation2 + $0x68] sm:$0xff] }
  0x16   :  { %416 = vmatpush.bf16.msra.mxu0 %v355_v60  ;;  %v371_v5 = vpack.c.bf16 %v265_v62, %v264_v61  ;;  %v230_v6 = vcvt.s32.f32 %v102_v63  ;;  %v118_v7 = vunpack.c.0.s8 %v68_v37  ;;  %v119_v8 = vunpack.c.1.s8 %v68_v37  ;;  %v66_v62 = vld [vmem:[#allocation2 + $0x20] sm:$0xff] }
  0x17   :  { %429 = vmatpush.bf16.msra.mxu1 %v363_v1  ;;  %v379_v10 = vpack.c.bf16 %v281_v3, %v280_v2  ;;  %v231_v11 = vcvt.s32.f32 %v103_v4  ;;  %v134_v12 = vunpack.c.0.s8 %v72_v42  ;;  %v135_v13 = vunpack.c.1.s8 %v72_v42  ;;  %v70_v3 = vld [vmem:[#allocation2 + $0x40] sm:$0xff] }
  0x18   :  { %442 = vmatpush.bf16.msra.mxu2 %v371_v5  ;;  %v246_v14 = vcvt.s32.f32 %v118_v7  ;;  %v247_v15 = vcvt.s32.f32 %v119_v8  ;;  %v150_v16 = vunpack.c.0.s8 %v76_v47  ;;  %v151_v17 = vunpack.c.1.s8 %v76_v47  ;;  %v74_v8 = vld [vmem:[#allocation2 + $0x60] sm:$0xff] }
  0x19   :  { %455 = vmatpush.bf16.msra.mxu3 %v379_v10  ;;  %v354_v19 = vpack.c.bf16 %v231_v11, %v230_v6  ;;  %v262_v20 = vcvt.s32.f32 %v134_v12  ;;  %v263_v21 = vcvt.s32.f32 %v135_v13  ;;  %v100_v22 = vunpack.c.2.s8 %v63_v9 }
  0x1a   :  { %v362_v24 = vpack.c.bf16 %v247_v15, %v246_v14  ;;  %v278_v25 = vcvt.s32.f32 %v150_v16  ;;  %v279_v26 = vcvt.s32.f32 %v151_v17  ;;  %v101_v27 = vunpack.c.3.s8 %v63_v9 }
  0x1b   :  { %417 = vmatpush.bf16.msra.mxu0 %v354_v19  ;;  %v370_v29 = vpack.c.bf16 %v263_v21, %v262_v20  ;;  %v228_v30 = vcvt.s32.f32 %v100_v22  ;;  %v116_v31 = vunpack.c.2.s8 %v67_v18  ;;  %v117_v32 = vunpack.c.3.s8 %v67_v18 }
  0x1c   :  { %430 = vmatpush.bf16.msra.mxu1 %v362_v24  ;;  %v378_v33 = vpack.c.bf16 %v279_v26, %v278_v25  ;;  %v229_v34 = vcvt.s32.f32 %v101_v27  ;;  %v132_v35 = vunpack.c.2.s8 %v71_v23  ;;  %v133_v36 = vunpack.c.3.s8 %v71_v23 }
  0x1d   :  { %443 = vmatpush.bf16.msra.mxu2 %v370_v29  ;;  %v244_v37 = vcvt.s32.f32 %v116_v31  ;;  %v245_v38 = vcvt.s32.f32 %v117_v32  ;;  %v148_v39 = vunpack.c.2.s8 %v75_v28  ;;  %v149_v40 = vunpack.c.3.s8 %v75_v28 }
  0x1e   :  { %456 = vmatpush.bf16.msra.mxu3 %v378_v33  ;;  %v353_v41 = vpack.c.bf16 %v229_v34, %v228_v30  ;;  %v260_v42 = vcvt.s32.f32 %v132_v35  ;;  %v261_v43 = vcvt.s32.f32 %v133_v36  ;;  %v98_v44 = vunpack.c.0.s8 %v63_v9  ;;  %v81_v33 = vld [vmem:[#allocation2 + $0x98] sm:$0xff] }
  0x1f   :  { %v361_v45 = vpack.c.bf16 %v245_v38, %v244_v37  ;;  %v276_v46 = vcvt.s32.f32 %v148_v39  ;;  %v277_v47 = vcvt.s32.f32 %v149_v40  ;;  %v99_v48 = vunpack.c.1.s8 %v63_v9 }
  0x20   :  { %418 = vmatpush.bf16.msra.mxu0 %v353_v41  ;;  %v369_v49 = vpack.c.bf16 %v261_v43, %v260_v42  ;;  %v226_v50 = vcvt.s32.f32 %v98_v44  ;;  %v114_v51 = vunpack.c.0.s8 %v67_v18  ;;  %v115_v52 = vunpack.c.1.s8 %v67_v18  ;;  %v85_v42 = vld [vmem:[#allocation2 + $0xb8] sm:$0xff] }
  0x21   :  { %431 = vmatpush.bf16.msra.mxu1 %v361_v45  ;;  %v377_v54 = vpack.c.bf16 %v277_v47, %v276_v46  ;;  %v227_v55 = vcvt.s32.f32 %v99_v48  ;;  %v130_v56 = vunpack.c.0.s8 %v71_v23  ;;  %v131_v57 = vunpack.c.1.s8 %v71_v23  ;;  %v89_v47 = vld [vmem:[#allocation2 + $0xd8] sm:$0xff] }
  0x22   :  { %444 = vmatpush.bf16.msra.mxu2 %v369_v49  ;;  %v242_v58 = vcvt.s32.f32 %v114_v51  ;;  %v243_v59 = vcvt.s32.f32 %v115_v52  ;;  %v146_v60 = vunpack.c.0.s8 %v75_v28  ;;  %v147_v61 = vunpack.c.1.s8 %v75_v28  ;;  %v93_v52 = vld [vmem:[#allocation2 + $0xf8] sm:$0xff] }
  0x23   :  { %457 = vmatpush.bf16.msra.mxu3 %v377_v54  ;;  %v352_v63 = vpack.c.bf16 %v227_v55, %v226_v50  ;;  %v258_v0 = vcvt.s32.f32 %v130_v56  ;;  %v259_v1 = vcvt.s32.f32 %v131_v57  ;;  %v96_v2 = vunpack.c.2.s8 %v62_v53 }
  0x24   :  { %v360_v4 = vpack.c.bf16 %v243_v59, %v242_v58  ;;  %v274_v5 = vcvt.s32.f32 %v146_v60  ;;  %v275_v6 = vcvt.s32.f32 %v147_v61  ;;  %v97_v7 = vunpack.c.3.s8 %v62_v53 }
  0x25   :  { %419 = vmatpush.bf16.msra.mxu0 %v352_v63  ;;  %v368_v9 = vpack.c.bf16 %v259_v1, %v258_v0  ;;  %v224_v10 = vcvt.s32.f32 %v96_v2  ;;  %v112_v11 = vunpack.c.2.s8 %v66_v62  ;;  %v113_v12 = vunpack.c.3.s8 %v66_v62 }
  0x26   :  { %432 = vmatpush.bf16.msra.mxu1 %v360_v4  ;;  %v376_v13 = vpack.c.bf16 %v275_v6, %v274_v5  ;;  %v225_v14 = vcvt.s32.f32 %v97_v7  ;;  %v128_v15 = vunpack.c.2.s8 %v70_v3  ;;  %v129_v16 = vunpack.c.3.s8 %v70_v3 }
  0x27   :  { %445 = vmatpush.bf16.msra.mxu2 %v368_v9  ;;  %v240_v17 = vcvt.s32.f32 %v112_v11  ;;  %v241_v18 = vcvt.s32.f32 %v113_v12  ;;  %v144_v19 = vunpack.c.2.s8 %v74_v8  ;;  %v145_v20 = vunpack.c.3.s8 %v74_v8  ;;  %v32_v9 = vld [vmem:[%s679_s0 + $0x8] sm:$0xff] }
  0x28   :  { %458 = vmatpush.bf16.msra.mxu3 %v376_v13  ;;  %v351_v21 = vpack.c.bf16 %v225_v14, %v224_v10  ;;  %v256_v22 = vcvt.s32.f32 %v128_v15  ;;  %v257_v23 = vcvt.s32.f32 %v129_v16  ;;  %v94_v24 = vunpack.c.0.s8 %v62_v53  ;;  %v40_v14 = vld.sshfl [vmem:[#allocation1 + $0x10] sm:$0xff pattern:$0x73625140]  ;;  %37 = vst [vmem:[#allocation1 + $0x20] ss:$4 sm:$0xff] %v32_v9 }
  0x29   :  { %v359_v25 = vpack.c.bf16 %v241_v18, %v240_v17  ;;  %v272_v26 = vcvt.s32.f32 %v144_v19  ;;  %v273_v27 = vcvt.s32.f32 %v145_v20  ;;  %v95_v28 = vunpack.c.1.s8 %v62_v53  ;;  %v661_v19 = vld [vmem:[#allocation2 + $0x90] sm:$0xff] }
  0x2a   :  { %420 = vmatpush.bf16.msra.mxu0 %v351_v21  ;;  %v367_v29 = vpack.c.bf16 %v257_v23, %v256_v22  ;;  %v222_v30 = vcvt.s32.f32 %v94_v24  ;;  %v110_v31 = vunpack.c.0.s8 %v66_v62  ;;  %v111_v32 = vunpack.c.1.s8 %v66_v62  ;;  %v84_v24 = vld [vmem:[#allocation2 + $0xb0] sm:$0xff] }
  0x2b   :  { %433 = vmatpush.bf16.msra.mxu1 %v359_v25  ;;  %v375_v34 = vpack.c.bf16 %v273_v27, %v272_v26  ;;  %v223_v35 = vcvt.s32.f32 %v95_v28  ;;  %v126_v36 = vunpack.c.0.s8 %v70_v3  ;;  %v127_v37 = vunpack.c.1.s8 %v70_v3 }
  0x2c   :  { %446 = vmatpush.bf16.msra.mxu2 %v367_v29  ;;  %v238_v38 = vcvt.s32.f32 %v110_v31  ;;  %v239_v39 = vcvt.s32.f32 %v111_v32  ;;  %v142_v40 = vunpack.c.0.s8 %v74_v8  ;;  %v143_v41 = vunpack.c.1.s8 %v74_v8  ;;  %v88_v29 = vld [vmem:[#allocation2 + $0xd0] sm:$0xff] }
  0x2d   :  { %459 = vmatpush.bf16.msra.mxu3 %v375_v34  ;;  %v350_v43 = vpack.c.bf16 %v223_v35, %v222_v30  ;;  %v254_v44 = vcvt.s32.f32 %v126_v36  ;;  %v255_v45 = vcvt.s32.f32 %v127_v37  ;;  %v172_v46 = vunpack.c.2.s8 %v81_v33  ;;  %v664_v34 = vld [vmem:[#allocation2 + $0xf0] sm:$0xff] }
  0x2e   :  { %v358_v48 = vpack.c.bf16 %v239_v39, %v238_v38  ;;  %v270_v49 = vcvt.s32.f32 %v142_v40  ;;  %v271_v50 = vcvt.s32.f32 %v143_v41  ;;  %v173_v51 = vunpack.c.3.s8 %v81_v33  ;;  %v38_v39 = vld.sshfl [vmem:[#allocation1] sm:$0xff pattern:$0x73625140] }
  0x2f   :  { %421 = vmatpush.bf16.msra.mxu0 %v350_v43  ;;  %v366_v53 = vpack.c.bf16 %v255_v45, %v254_v44  ;;  %v300_v54 = vcvt.s32.f32 %v172_v46  ;;  %v188_v55 = vunpack.c.2.s8 %v85_v42  ;;  %v189_v56 = vunpack.c.3.s8 %v85_v42  ;;  %v41_v44 = vld.sshfl [vmem:[#allocation1 + $0x18] sm:$0xff pattern:$0x73625140] }
  0x30   :  { %434 = vmatpush.bf16.msra.mxu1 %v358_v48  ;;  %v374_v57 = vpack.c.bf16 %v271_v50, %v270_v49  ;;  %v301_v58 = vcvt.s32.f32 %v173_v51  ;;  %v204_v59 = vunpack.c.2.s8 %v89_v47  ;;  %v205_v60 = vunpack.c.3.s8 %v89_v47  ;;  %v39_v49 = vld.sshfl [vmem:[#allocation1 + $0x8] sm:$0xff pattern:$0x73625140] }
  0x31   :  { %447 = vmatpush.bf16.msra.mxu2 %v366_v53  ;;  %v316_v61 = vcvt.s32.f32 %v188_v55  ;;  %v317_v62 = vcvt.s32.f32 %v189_v56  ;;  %v220_v63 = vunpack.c.2.s8 %v93_v52  ;;  %v221_v0 = vunpack.c.3.s8 %v93_v52 }
  0x32   :  { %460 = vmatpush.bf16.msra.mxu3 %v374_v57  ;;  %v389_v1 = vpack.c.bf16 %v301_v58, %v300_v54  ;;  %v332_v2 = vcvt.s32.f32 %v204_v59  ;;  %v333_v3 = vcvt.s32.f32 %v205_v60  ;;  %v170_v4 = vunpack.c.0.s8 %v81_v33 }
  0x33   :  { %v397_v5 = vpack.c.bf16 %v317_v62, %v316_v61  ;;  %v348_v6 = vcvt.s32.f32 %v220_v63  ;;  %v349_v7 = vcvt.s32.f32 %v221_v0  ;;  %v171_v8 = vunpack.c.1.s8 %v81_v33 }
  0x34   :  { %466 = vmatpush.bf16.msrb.mxu0 %v389_v1  ;;  %v405_v10 = vpack.c.bf16 %v333_v3, %v332_v2  ;;  %v298_v11 = vcvt.s32.f32 %v170_v4  ;;  %v186_v12 = vunpack.c.0.s8 %v85_v42  ;;  %v187_v13 = vunpack.c.1.s8 %v85_v42  ;;  %v79_v2 = vld [vmem:[#allocation2 + $0x88] sm:$0xff] }
  0x35   :  { %479 = vmatpush.bf16.msrb.mxu1 %v397_v5  ;;  %v413_v15 = vpack.c.bf16 %v349_v7, %v348_v6  ;;  %v299_v16 = vcvt.s32.f32 %v171_v8  ;;  %v202_v17 = vunpack.c.0.s8 %v89_v47  ;;  %v203_v18 = vunpack.c.1.s8 %v89_v47  ;;  %v83_v7 = vld [vmem:[#allocation2 + $0xa8] sm:$0xff] }
  0x36   :  { %492 = vmatpush.bf16.msrb.mxu2 %v405_v10  ;;  %v314_v20 = vcvt.s32.f32 %v186_v12  ;;  %v315_v21 = vcvt.s32.f32 %v187_v13  ;;  %v218_v22 = vunpack.c.0.s8 %v93_v52  ;;  %v219_v23 = vunpack.c.1.s8 %v93_v52 }
  0x37   :  { %505 = vmatpush.bf16.msrb.mxu3 %v413_v15  ;;  %v388_v25 = vpack.c.bf16 %v299_v16, %v298_v11  ;;  %v330_v26 = vcvt.s32.f32 %v202_v17  ;;  %v331_v27 = vcvt.s32.f32 %v203_v18  ;;  %v56_v28 = vpack.c.bf16 %v40_v14, %v40_v14  ;;  %v87_v16 = vld [vmem:[#allocation2 + $0xc8] sm:$0xff] }
  0x38   :  { %v396_v30 = vpack.c.bf16 %v315_v21, %v314_v20  ;;  %v346_v31 = vcvt.s32.f32 %v218_v22  ;;  %v347_v32 = vcvt.s32.f32 %v219_v23  ;;  %v168_v33 = vunpack.c.2.s8 %v661_v19  ;;  %v91_v21 = vld [vmem:[#allocation2 + $0xe8] sm:$0xff] }
  0x39   :  { %467 = vmatpush.bf16.msrb.mxu0 %v388_v25  ;;  %v404_v35 = vpack.c.bf16 %v331_v27, %v330_v26  ;;  %448 = vmatmul.bf16.vlgmr.msra.gmra.mxu2 %v56_v28  ;;  %v169_v36 = vunpack.c.3.s8 %v661_v19  ;;  %v184_v37 = vunpack.c.2.s8 %v84_v24  ;;  %v185_v38 = vunpack.c.3.s8 %v84_v24 }
  0x3a   :  { %480 = vmatpush.bf16.msrb.mxu1 %v396_v30  ;;  %v412_v40 = vpack.c.bf16 %v347_v32, %v346_v31  ;;  %v296_v41 = vcvt.s32.f32 %v168_v33  ;;  %v200_v42 = vunpack.c.2.s8 %v88_v29  ;;  %v201_v43 = vunpack.c.3.s8 %v88_v29 }
  0x3b   :  { %493 = vmatpush.bf16.msrb.mxu2 %v404_v35  ;;  %v297_v45 = vcvt.s32.f32 %v169_v36  ;;  %v312_v46 = vcvt.s32.f32 %v184_v37  ;;  %v313_v47 = vcvt.s32.f32 %v185_v38  ;;  %v216_v48 = vunpack.c.2.s8 %v664_v34 }
  0x3c   :  { %506 = vmatpush.bf16.msrb.mxu3 %v412_v40  ;;  %v328_v50 = vcvt.s32.f32 %v200_v42  ;;  %v329_v51 = vcvt.s32.f32 %v201_v43  ;;  %v217_v52 = vunpack.c.3.s8 %v664_v34  ;;  %v54_v53 = vpack.c.bf16 %v38_v39, %v38_v39 }
  0x3d   :  { %v387_v54 = vpack.c.bf16 %v297_v45, %v296_v41  ;;  %v395_v55 = vpack.c.bf16 %v313_v47, %v312_v46  ;;  %v344_v56 = vcvt.s32.f32 %v216_v48  ;;  %v57_v57 = vpack.c.bf16 %v41_v44, %v41_v44  ;;  %v78_v46 = vld [vmem:[#allocation2 + $0x80] sm:$0xff] }
  0x3e   :  { %v403_v58 = vpack.c.bf16 %v329_v51, %v328_v50  ;;  %v345_v59 = vcvt.s32.f32 %v217_v52  ;;  %422 = vmatmul.bf16.vlgmr.msra.gmra.mxu0 %v54_v53  ;;  %v55_v60 = vpack.c.bf16 %v39_v49, %v39_v49  ;;  %v166_v61 = vunpack.c.0.s8 %v661_v19 }
  0x3f   :  { %468 = vmatpush.bf16.msrb.mxu0 %v387_v54  ;;  %481 = vmatpush.bf16.msrb.mxu1 %v395_v55  ;;  %v167_v62 = vunpack.c.1.s8 %v661_v19  ;;  %v182_v63 = vunpack.c.0.s8 %v84_v24  ;;  %v183_v0 = vunpack.c.1.s8 %v84_v24  ;;  %v198_v1 = vunpack.c.0.s8 %v88_v29  ;;  %v82_v55 = vld [vmem:[#allocation2 + $0xa0] sm:$0xff] }
  0x40   :  { %494 = vmatpush.bf16.msrb.mxu2 %v403_v58  ;;  %v411_v3 = vpack.c.bf16 %v345_v59, %v344_v56  ;;  %461 = vmatmul.bf16.vlgmr.msra.gmra.mxu3 %v57_v57  ;;  %v294_v4 = vcvt.s32.f32 %v166_v61  ;;  %v199_v5 = vunpack.c.1.s8 %v88_v29  ;;  %v214_v6 = vunpack.c.0.s8 %v664_v34 }
  0x41   :  { %435 = vmatmul.bf16.vlgmr.msra.gmra.mxu1 %v55_v60  ;;  %v295_v8 = vcvt.s32.f32 %v167_v62  ;;  %v310_v9 = vcvt.s32.f32 %v182_v63  ;;  %v311_v10 = vcvt.s32.f32 %v183_v0  ;;  %v326_v11 = vcvt.s32.f32 %v198_v1  ;;  %v86_v60 = vld [vmem:[#allocation2 + $0xc0] sm:$0xff] }
  0x42   :  { %507 = vmatpush.bf16.msrb.mxu3 %v411_v3  ;;  %v327_v12 = vcvt.s32.f32 %v199_v5  ;;  %v215_v13 = vunpack.c.1.s8 %v664_v34  ;;  %v342_v14 = vcvt.s32.f32 %v214_v6  ;;  %v164_v15 = vunpack.c.2.s8 %v79_v2  ;;  %v90_v1 = vld [vmem:[#allocation2 + $0xe0] sm:$0xff] }
  0x43   :  { %v386_v17 = vpack.c.bf16 %v295_v8, %v294_v4  ;;  %v394_v18 = vpack.c.bf16 %v311_v10, %v310_v9  ;;  %v165_v19 = vunpack.c.3.s8 %v79_v2  ;;  %v180_v20 = vunpack.c.2.s8 %v83_v7 }
  0x44   :  { %v402_v22 = vpack.c.bf16 %v327_v12, %v326_v11  ;;  %v343_v23 = vcvt.s32.f32 %v215_v13  ;;  %v292_v24 = vcvt.s32.f32 %v164_v15  ;;  %v181_v25 = vunpack.c.3.s8 %v83_v7 }
  0x45   :  { %469 = vmatpush.bf16.msrb.mxu0 %v386_v17  ;;  %482 = vmatpush.bf16.msrb.mxu1 %v394_v18  ;;  %v293_v26 = vcvt.s32.f32 %v165_v19  ;;  %v308_v27 = vcvt.s32.f32 %v180_v20  ;;  %v196_v28 = vunpack.c.2.s8 %v87_v16  ;;  %v197_v29 = vunpack.c.3.s8 %v87_v16 }
  0x46   :  { %495 = vmatpush.bf16.msrb.mxu2 %v402_v22  ;;  %v410_v30 = vpack.c.bf16 %v343_v23, %v342_v14  ;;  %v309_v31 = vcvt.s32.f32 %v181_v25  ;;  %v212_v32 = vunpack.c.2.s8 %v91_v21  ;;  %v213_v33 = vunpack.c.3.s8 %v91_v21 }
  0x47   :  { %v385_v34 = vpack.c.bf16 %v293_v26, %v292_v24  ;;  %v324_v35 = vcvt.s32.f32 %v196_v28  ;;  %v325_v36 = vcvt.s32.f32 %v197_v29  ;;  %v162_v37 = vunpack.c.0.s8 %v79_v2 }
  0x48   :  { %508 = vmatpush.bf16.msrb.mxu3 %v410_v30  ;;  %v393_v38 = vpack.c.bf16 %v309_v31, %v308_v27  ;;  %v340_v39 = vcvt.s32.f32 %v212_v32  ;;  %v341_v40 = vcvt.s32.f32 %v213_v33  ;;  %v163_v41 = vunpack.c.1.s8 %v79_v2  ;;  %v42_v30 = vld.sshfl [vmem:[#allocation1 + $0x20] sm:$0xff pattern:$0x73625140] }
  0x49   :  { %470 = vmatpush.bf16.msrb.mxu0 %v385_v34  ;;  %v401_v42 = vpack.c.bf16 %v325_v36, %v324_v35  ;;  %v290_v43 = vcvt.s32.f32 %v162_v37  ;;  %v178_v44 = vunpack.c.0.s8 %v83_v7  ;;  %v179_v45 = vunpack.c.1.s8 %v83_v7  ;;  %v43_v35 = vld.sshfl [vmem:[#allocation1 + $0x28] sm:$0xff pattern:$0x73625140] }
  0x4a   :  { %483 = vmatpush.bf16.msrb.mxu1 %v393_v38  ;;  %v409_v47 = vpack.c.bf16 %v341_v40, %v340_v39  ;;  %v291_v48 = vcvt.s32.f32 %v163_v41  ;;  %v194_v49 = vunpack.c.0.s8 %v87_v16  ;;  %v195_v50 = vunpack.c.1.s8 %v87_v16  ;;  %v44_v39 = vld.sshfl [vmem:[#allocation1 + $0x30] sm:$0xff pattern:$0x73625140] }
  0x4b   :  { %496 = vmatpush.bf16.msrb.mxu2 %v401_v42  ;;  %v306_v51 = vcvt.s32.f32 %v178_v44  ;;  %v307_v52 = vcvt.s32.f32 %v179_v45  ;;  %v210_v53 = vunpack.c.0.s8 %v91_v21  ;;  %v211_v54 = vunpack.c.1.s8 %v91_v21  ;;  %v45_v44 = vld.sshfl [vmem:[#allocation1 + $0x38] sm:$0xff pattern:$0x73625140] }
  0x4c   :  { %509 = vmatpush.bf16.msrb.mxu3 %v409_v47  ;;  %v384_v56 = vpack.c.bf16 %v291_v48, %v290_v43  ;;  %v322_v57 = vcvt.s32.f32 %v194_v49  ;;  %v323_v58 = vcvt.s32.f32 %v195_v50  ;;  %v160_v59 = vunpack.c.2.s8 %v78_v46 }
  0x4d   :  { %v392_v61 = vpack.c.bf16 %v307_v52, %v306_v51  ;;  %v338_v62 = vcvt.s32.f32 %v210_v53  ;;  %v339_v63 = vcvt.s32.f32 %v211_v54  ;;  %v161_v0 = vunpack.c.3.s8 %v78_v46 }
  0x4e   :  { %471 = vmatpush.bf16.msrb.mxu0 %v384_v56  ;;  %v400_v2 = vpack.c.bf16 %v323_v58, %v322_v57  ;;  %v288_v3 = vcvt.s32.f32 %v160_v59  ;;  %v176_v4 = vunpack.c.2.s8 %v82_v55  ;;  %v177_v5 = vunpack.c.3.s8 %v82_v55 }
  0x4f   :  { %484 = vmatpush.bf16.msrb.mxu1 %v392_v61  ;;  %v408_v6 = vpack.c.bf16 %v339_v63, %v338_v62  ;;  %v289_v7 = vcvt.s32.f32 %v161_v0  ;;  %v192_v8 = vunpack.c.2.s8 %v86_v60  ;;  %v193_v9 = vunpack.c.3.s8 %v86_v60 }
  0x50   :  { %497 = vmatpush.bf16.msrb.mxu2 %v400_v2  ;;  %v304_v10 = vcvt.s32.f32 %v176_v4  ;;  %v305_v11 = vcvt.s32.f32 %v177_v5  ;;  %v208_v12 = vunpack.c.2.s8 %v90_v1  ;;  %v209_v13 = vunpack.c.3.s8 %v90_v1 }
  0x51   :  { %510 = vmatpush.bf16.msrb.mxu3 %v408_v6  ;;  %v383_v14 = vpack.c.bf16 %v289_v7, %v288_v3  ;;  %v320_v15 = vcvt.s32.f32 %v192_v8  ;;  %v321_v16 = vcvt.s32.f32 %v193_v9  ;;  %v158_v17 = vunpack.c.0.s8 %v78_v46  ;;  %v571_v7 = vld [vmem:[%s681_s2] ss:$0 sm:$0xff]  ;;  %s631_s2 = smov [#allocation5]  }
  0x52   :  { %v391_v18 = vpack.c.bf16 %v305_v11, %v304_v10  ;;  %v336_v19 = vcvt.s32.f32 %v208_v12  ;;  %v337_v20 = vcvt.s32.f32 %v209_v13  ;;  %v159_v21 = vunpack.c.1.s8 %v78_v46  ;;  %s555_s23 = sshll.u32 %s631_s2, 4  ;;  %s556_s23 = int_to_ptr.vmem [resolvable:$true] %s555_s23 }
  0x53   :  { %472 = vmatpush.bf16.msrb.mxu0 %v383_v14  ;;  %v399_v22 = vpack.c.bf16 %v321_v16, %v320_v15  ;;  %v286_v23 = vcvt.s32.f32 %v158_v17  ;;  %v174_v24 = vunpack.c.0.s8 %v82_v55  ;;  %v175_v25 = vunpack.c.1.s8 %v82_v55 }
  0x54   :  { %485 = vmatpush.bf16.msrb.mxu1 %v391_v18  ;;  %v407_v26 = vpack.c.bf16 %v337_v20, %v336_v19  ;;  %v287_v27 = vcvt.s32.f32 %v159_v21  ;;  %v190_v28 = vunpack.c.0.s8 %v86_v60  ;;  %v191_v29 = vunpack.c.1.s8 %v86_v60 }
  0x55   :  { %498 = vmatpush.bf16.msrb.mxu2 %v399_v22  ;;  %v302_v31 = vcvt.s32.f32 %v174_v24  ;;  %v303_v32 = vcvt.s32.f32 %v175_v25  ;;  %v206_v33 = vunpack.c.0.s8 %v90_v1  ;;  %v207_v34 = vunpack.c.1.s8 %v90_v1 }
  0x56   :  { %511 = vmatpush.bf16.msrb.mxu3 %v407_v26  ;;  %v382_v36 = vpack.c.bf16 %v287_v27, %v286_v23  ;;  %v318_v37 = vcvt.s32.f32 %v190_v28  ;;  %v319_v38 = vcvt.s32.f32 %v191_v29  ;;  %v58_v43 = vpack.c.bf16 %v42_v30, %v42_v30 }
  0x57   :  { %v390_v40 = vpack.c.bf16 %v303_v32, %v302_v31  ;;  %v334_v41 = vcvt.s32.f32 %v206_v33  ;;  %v335_v42 = vcvt.s32.f32 %v207_v34  ;;  %v59_v46 = vpack.c.bf16 %v43_v35, %v43_v35 }
  0x58   :  { %473 = vmatpush.bf16.msrb.mxu0 %v382_v36  ;;  %v398_v45 = vpack.c.bf16 %v319_v38, %v318_v37  ;;  %v60_v48 = vpack.c.bf16 %v44_v39, %v44_v39  ;;  %v61_v49 = vpack.c.bf16 %v45_v44, %v45_v44 }
  0x59   :  { %486 = vmatpush.bf16.msrb.mxu1 %v390_v40  ;;  %v406_v47 = vpack.c.bf16 %v335_v42, %v334_v41 }
  0x5a   :  { %499 = vmatpush.bf16.msrb.mxu2 %v398_v45 }
  0x5b   :  { %512 = vmatpush.bf16.msrb.mxu3 %v406_v47  ;;  %474 = vmatmul.bf16.vlgmr.msrb.gmra.mxu0 %v58_v43 }
  0x5c   :  { %487 = vmatmul.bf16.vlgmr.msrb.gmra.mxu1 %v59_v46 }
  0x5d   :  { %500 = vmatmul.bf16.vlgmr.msrb.gmra.mxu2 %v60_v48 }
  0x5e   :  { %513 = vmatmul.bf16.vlgmr.msrb.gmra.mxu3 %v61_v49 }
  0xbb   :  { %v423_v50 = vpop.f32.mrf.mxu0 }
  0xbc   :  { %v449_v51 = vpop.f32.mrf.mxu2 }
  0xbe   :  { %v436_v52 = vpop.f32.mrf.mxu1 }
  0xbf   :  { %v437_v58 = vadd.f32 %v436_v52, %v423_v50 }
  0xc1   :  { %v450_v59 = vadd.f32 %v449_v51, %v437_v58 }
  0xc3   :  { %v462_v53 = vpop.f32.mrf.mxu3  ;;  %v425_v54 = vpop.f32.mrf.mxu0 }
  0xc4   :  { %v451_v55 = vpop.f32.mrf.mxu2  ;;  %v463_v61 = vadd.f32 %v462_v53, %v450_v59 }
  0xc6   :  { %v438_v56 = vpop.f32.mrf.mxu1 }
  0xcb   :  { %v464_v57 = vpop.f32.mrf.mxu3 }
  0xd8   :  { %v475_v60 = vpop.f32.mrf.mxu0 }
  0xd9   :  { %v488_v62 = vpop.f32.mrf.mxu1  ;;  %v476_v63 = vadd.f32 %v475_v60, %v463_v61 }
  0xdb   :  { %v489_v0 = vadd.f32 %v488_v62, %v476_v63 }
  0xe0   :  { %v501_v1 = vpop.f32.mrf.mxu2  ;;  %v477_v2 = vpop.f32.mrf.mxu0 }
  0xe1   :  { %v502_v3 = vadd.f32 %v501_v1, %v489_v0  ;;  %v514_v4 = vpop.f32.mrf.mxu3  ;;  %v490_v5 = vpop.f32.mrf.mxu1 }
  0xe3   :  { %v515_v6 = vadd.f32 %v514_v4, %v502_v3 }
  0xe5   :  { %v518_v8 = vmul.f32 0.00024602714, %v515_v6 }
  0xe7   :  { %v523_v9 = vadd.f32 %v571_v7, %v518_v8 }
  0xe8   :  { %v503_v10 = vpop.f32.mrf.mxu2 }
  0xe9   :  { %v516_v11 = vpop.f32.mrf.mxu3  ;;  %v525_v12 = vsel %vm524_vm0, %v523_v9, -inf }
  0xea   :  { %526 = vmax.xlane.f32.xlu0 %v525_v12 }
 0x15d   :  { %v527_v13 = vpop.xlane.xlu0 %526 }
 0x15e   :  { %v528_v14 = vsub.f32 %v523_v9, %v527_v13 }
 0x160   :  { %v529_v15 = vmul.f32 1.442695, %v528_v14 }
 0x162   :  { %572 = vpow2.f32 %v529_v15 }
 0x168   :  { %v573_v16 = vpop.eup %572 }
 0x169   :  { %v531_v17 = vsel %vm524_vm0, %v573_v16, 0.0 }
 0x16a   :  { %532 = vadd.xlane.f32.xlu0 %v531_v17 }
 0x1dd   :  { %v533_v18 = vpop.xlane.xlu0 %532 }
 0x1de   :  { %574 = vrcp.f32 %v533_v18  ;;  %v545_v22 = vand.u32 2147483648, %v533_v18  ;;  %v543_v24 = vand.u32 2147483647, %v533_v18  ;;  %vm539_vm2 = vweird.f32 %v533_v18 }
 0x1e0   :  { %v546_v26 = vor.u32 1.1754944e-38, %v545_v22  ;;  %vm544_vm4 = vcmp.eq.f32.partialorder %v543_v24, 8.507059e+37 }
 0x1e4   :  { %v575_v19 = vpop.eup %574 }
 0x1e5   :  { %v535_v20 = vmul.f32 %v575_v19, %v533_v18  ;;  %vm540_vm1 = vweird.f32 %v575_v19 }
 0x1e6   :  { %vm541_vm3 = vmor %vm539_vm2, %vm540_vm1 }
 0x1e7   :  { %v536_v21 = vsub.f32 1.0, %v535_v20 }
 0x1e9   :  { %v537_v23 = vmul.f32 %v575_v19, %v536_v21 }
 0x1eb   :  { %v538_v25 = vadd.f32 %v575_v19, %v537_v23 }
 0x1ed   :  { %v542_v27 = vsel %vm541_vm3, %v575_v19, %v538_v25 }
 0x1ee   :  { %v547_v28 = vsel %vm544_vm4, %v546_v26, %v542_v27 }
 0x1ef   :  { %v548_v29 = vmul.f32 %v573_v16, %v547_v28 }
 0x1f1   :  { %549 = vst [vmem:[#allocation5] sm:$0x3] %v548_v29 }
 0x1f2   :  { %560 = dma.vmem_to_hbm [thread:$0]  %s556_s23, 32, %s558_s26, [#allocation4]  }
 0x1f3   :  { %626 = dma.done.wait [#allocation4], 32  }
 0x1f4   :  { %627 = vsyncadd [#allocation4], 4294967264 }
 0x1f5   :  { %565 = vsyncpa [#allocation3], 1 }
 0x1f6   :  { %566 = vsyncpa [#allocation4], 1 }

</bundles_post_ra>
